<compile_context>
chip_gen: v5e
topology: v5e:2x2
jax: 0.10.0
libtpu: 0.0.40
codegen_flags: <defaults>
</compile_context>

<pallas_src>
import functools
import math

import jax
import jax.numpy as jnp
from jax.experimental import pallas as pl
from jax.experimental.pallas import tpu as pltpu


def _round_up(v, m):
    return ((v + m - 1) // m) * m


def _source_linear_kernel(x_ref, w1_ref, b1_ref, w2p_ref, b2p_ref, o_ref, *,
                          approximate_gelu):
    # dense: (tm, D_in) @ (D_in, H) -> MXU, f32 accumulation (inputs f32 or bf16)
    h = jnp.dot(x_ref[...], w1_ref[...], preferred_element_type=jnp.float32)
    h = h + b1_ref[...]

    if approximate_gelu:
        # tanh-GELU: one EUP tanh + a few VPU muls (much cheaper than erf's
        # VALU polynomial).  Opt-in; slight deviation from the erf reference.
        c = 0.7978845608028654  # sqrt(2/pi)
        h = 0.5 * h * (1.0 + jnp.tanh(c * (h + 0.044715 * (h * h * h))))
    else:
        # exact module semantics: gelu(x) = x * 0.5 * (1 + erf(x/sqrt(2)))
        h = h * 0.5 * (1.0 + jax.lax.erf(h * 0.7071067811865476))

    # BertLayerNorm stats over the last dim (two-pass, f32, eps=1e-12).
    # gamma/beta are folded into the decoder weights in the wrapper, so the
    # normalized activations are never materialized.
    mu = jnp.mean(h, axis=-1, keepdims=True)          # (tm, 1)
    d = h - mu                                        # (tm, H)
    var = jnp.mean(d * d, axis=-1, keepdims=True)     # (tm, 1)
    rstd = jax.lax.rsqrt(var + 1e-12)                 # (tm, 1)

    # decoder on the unscaled residual: VPU multiply + XLU lane reduction,
    # rstd applied to the per-row scalar (no (tm,H) `ln` temporary, no
    # operand transpose feeding a dot_general).
    dec = jnp.sum(d * w2p_ref[...], axis=-1, keepdims=True)   # (tm, 1)
    o_ref[...] = (dec * rstd + b2p_ref[...]).astype(o_ref.dtype)


def source_linear(x, w1, b1, gamma, beta, w2, b2, *, tm=None,
                  use_bf16_matmul=False, approximate_gelu=False):
    """x: (B, S, D_in) -> (B, S, 1) float32."""
    B, S, D_in = x.shape
    H = w1.shape[1]
    M = B * S

    in_dtype = jnp.bfloat16 if use_bf16_matmul else jnp.float32
    x2d = x.reshape(M, D_in).astype(in_dtype)
    w1c = w1.astype(in_dtype)
    b1r = b1.reshape(1, H).astype(jnp.float32)

    # Fold the LayerNorm affine into the decoder:
    #   (ln*gamma + beta) @ w2 + b2 == ln @ (gamma*w2) + (beta.w2 + b2)
    w2_vec = w2.reshape(H).astype(jnp.float32)
    w2p = (gamma.astype(jnp.float32) * w2_vec).reshape(1, H)
    b2p = (jnp.dot(beta.astype(jnp.float32), w2_vec)
           + b2.reshape(()).astype(jnp.float32)).reshape(1, 1)

    # ---- row-tile selection -------------------------------------------------
    if M <= 128:
        tm_eff = M                       # single full block, no alignment issues
    else:
        tm_hint = tm if tm is not None else (2048 if D_in <= 256 else 1024)
        in_bytes = 2 if use_bf16_matmul else 4
        # rough live set per row: double-buffered x tile + ~4 (row,H) f32 temps
        per_row = 2 * D_in * in_bytes + 4 * H * 4
        budget = 12 * 1024 * 1024        # headroom under v5e's 16 MiB scoped VMEM
        tm_cap = max(128, (budget // per_row) // 128 * 128)
        tm_two = _round_up(pl.cdiv(M, 2), 128)   # >= 2 grid tiles (v7x dual-TC)
        tm_eff = max(128, min(tm_hint, tm_cap, tm_two) // 128 * 128)
    n_tiles = pl.cdiv(M, tm_eff)
    # NOTE: no jnp.pad of x.  If tm_eff does not divide M, Pallas clips the
    # last block; garbage rows are row-local and their output writes are
    # dropped, so there is no extra HBM pass over x.

    in_bytes = 2 if use_bf16_matmul else 4
    cost = pl.CostEstimate(
        flops=2 * M * D_in * H + 4 * M * H,
        transcendentals=M * H + M,
        bytes_accessed=(M * D_in + D_in * H) * in_bytes + 4 * (3 * H + 1 + M),
    )

    kernel = functools.partial(_source_linear_kernel,
                               approximate_gelu=approximate_gelu)

    def build(single_buffer_weights):
        # Resident (constant-index) weights don't need double buffers.
        wkw = dict(pipeline_mode=pl.Buffered(1)) if single_buffer_weights else {}
        in_specs = [
            pl.BlockSpec((tm_eff, D_in), lambda i: (i, 0)),      # x: streamed
            pl.BlockSpec((D_in, H), lambda i: (0, 0), **wkw),    # W1: resident
            pl.BlockSpec((1, H), lambda i: (0, 0), **wkw),       # b1
            pl.BlockSpec((1, H), lambda i: (0, 0), **wkw),       # gamma*w2
            pl.BlockSpec((1, 1), lambda i: (0, 0), **wkw),       # beta.w2 + b2
        ]
        return pl.pallas_call(
            kernel,
            out_shape=jax.ShapeDtypeStruct((M, 1), jnp.float32),
            grid=(n_tiles,),
            in_specs=in_specs,
            out_specs=pl.BlockSpec((tm_eff, 1), lambda i: (i, 0)),
            compiler_params=pltpu.CompilerParams(
                dimension_semantics=("parallel",),
                vmem_limit_bytes=32 * 1024 * 1024,
            ),
            cost_estimate=cost,
        )

    try:
        out = build(True)(x2d, w1c, b1r, w2p, b2p)
    except Exception:
        # pipeline_mode/Buffered may be unavailable on some jax versions;
        # fall back to default double-buffered weights.
        out = build(False)(x2d, w1c, b1r, w2p, b2p)

    return out.reshape(B, S, 1)


def _reference(x, w1, b1, gamma, beta, w2, b2):
    h = jnp.einsum("bsd,dh->bsh", x, w1) + b1
    h = h * 0.5 * (1.0 + jax.lax.erf(h / math.sqrt(2.0)))
    mu = jnp.mean(h, axis=-1, keepdims=True)
    var = jnp.mean(jnp.square(h - mu), axis=-1, keepdims=True)
    ln = (h - mu) / jnp.sqrt(var + 1e-12)
    ln = ln * gamma + beta
    return jnp.einsum("bsh,ho->bso", ln, w2) + b2


if __name__ == "__main__":
    key = jax.random.PRNGKey(0)

    def make_params(k, d_in, h):
        kw1, kb1, kg, kbt, kw2, kb2 = jax.random.split(k, 6)
        w1 = jax.random.normal(kw1, (d_in, h), jnp.float32) * 0.05
        b1 = jax.random.normal(kb1, (h,), jnp.float32) * 0.05
        gamma = 1.0 + 0.1 * jax.random.normal(kg, (h,), jnp.float32)
        beta = 0.1 * jax.random.normal(kbt, (h,), jnp.float32)
        w2 = jax.random.normal(kw2, (h, 1), jnp.float32) * 0.05
        b2 = jax.random.normal(kb2, (1,), jnp.float32) * 0.05
        return w1, b1, gamma, beta, w2, b2

    k1, k2, k3, k4 = jax.random.split(key, 4)

    # Case 1: small shape (exact erf / f32 path, single tile).
    B, S, D_in, H = 2, 8, 32, 64
    x = jax.random.normal(k1, (B, S, D_in), jnp.float32)
    params = make_params(k2, D_in, H)
    out = jax.block_until_ready(source_linear(x, *params))
    ref = _reference(x, *params)
    assert out.shape == (B, S, 1)
    assert jnp.allclose(out, ref, atol=1e-4, rtol=1e-4), \
        float(jnp.max(jnp.abs(out - ref)))

    # Case 2: multi-tile grid with a ragged last tile (no input padding), f32/erf.
    B2, S2, D2, H2 = 2, 200, 128, 256
    x2 = jax.random.normal(k3, (B2, S2, D2), jnp.float32)
    params2 = make_params(k4, D2, H2)
    out2 = jax.block_until_ready(source_linear(x2, *params2))
    ref2 = _reference(x2, *params2)
    assert jnp.allclose(out2, ref2, atol=1e-4, rtol=1e-4), \
        float(jnp.max(jnp.abs(out2 - ref2)))

    # Case 3: opt-in fast path (bf16 MXU inputs + tanh-GELU), looser tolerance.
    out3 = jax.block_until_ready(
        source_linear(x, *params, use_bf16_matmul=True, approximate_gelu=True))
    assert jnp.allclose(out3, ref, atol=5e-2, rtol=5e-2), \
        float(jnp.max(jnp.abs(out3 - ref)))

    print("KERNEL_OK")
</pallas_src>

<mosaic_0001>
module attributes {stable_mosaic.version = 11 : i64} {
  func.func @_source_linear_kernel(%arg0: i32, %arg1: memref<16x32xf32, #tpu.memory_space<vmem>>, %arg2: memref<32x64xf32, #tpu.memory_space<vmem>>, %arg3: memref<1x64xf32, #tpu.memory_space<vmem>>, %arg4: memref<1x64xf32, #tpu.memory_space<vmem>>, %arg5: memref<1x1xf32, #tpu.memory_space<vmem>>, %arg6: memref<16x1xf32, #tpu.memory_space<vmem>>) attributes {dimension_semantics = [#tpu.dimension_semantics<parallel>], iteration_bounds = array<i64: 1>, scalar_prefetch = 0 : i64, scratch_operands = 0 : i64, tpu.core_type = #tpu.core_type<tc>, window_params = [{transform_indices = @transform_0, window_bounds = array<i64: 16, 32>}, {pipeline_mode = #tpu.pipeline_mode<synchronous>, transform_indices = @transform_1, window_bounds = array<i64: 32, 64>}, {pipeline_mode = #tpu.pipeline_mode<synchronous>, transform_indices = @transform_2, window_bounds = array<i64: 1, 64>}, {pipeline_mode = #tpu.pipeline_mode<synchronous>, transform_indices = @transform_3, window_bounds = array<i64: 1, 64>}, {pipeline_mode = #tpu.pipeline_mode<synchronous>, transform_indices = @transform_4, window_bounds = array<i64: 1, 1>}, {transform_indices = @transform_5, window_bounds = array<i64: 16, 1>}]} {
    %c0 = arith.constant 0 : index
    %c0_0 = arith.constant 0 : index
    %0 = vector.load %arg1[%c0, %c0_0] : memref<16x32xf32, #tpu.memory_space<vmem>>, vector<16x32xf32>
    %c0_1 = arith.constant 0 : index
    %c0_2 = arith.constant 0 : index
    %1 = vector.load %arg2[%c0_1, %c0_2] : memref<32x64xf32, #tpu.memory_space<vmem>>, vector<32x64xf32>
    %cst = arith.constant dense<0.000000e+00> : vector<16x64xf32>
    %2 = tpu.matmul %0, %1, %cst {dimension_numbers = #tpu.dot_dimension_numbers<[1], [0], [0], [1], [0, 0, 1, 1], [], []>} : vector<16x32xf32>, vector<32x64xf32>, vector<16x64xf32> -> vector<16x64xf32>
    %c0_3 = arith.constant 0 : index
    %c0_4 = arith.constant 0 : index
    %3 = vector.load %arg3[%c0_3, %c0_4] : memref<1x64xf32, #tpu.memory_space<vmem>>, vector<1x64xf32>
    %4 = vector.broadcast %3 : vector<1x64xf32> to vector<16x64xf32>
    %5 = arith.addf %2, %4 : vector<16x64xf32>
    %cst_5 = arith.constant 5.000000e-01 : f32
    %6 = vector.broadcast %cst_5 : f32 to vector<16x64xf32>
    %7 = arith.mulf %5, %6 : vector<16x64xf32>
    %cst_6 = arith.constant 0.707106769 : f32
    %8 = vector.broadcast %cst_6 : f32 to vector<16x64xf32>
    %9 = arith.mulf %5, %8 : vector<16x64xf32>
    %10 = math.erf %9 : vector<16x64xf32>
    %cst_7 = arith.constant 1.000000e+00 : f32
    %11 = vector.broadcast %cst_7 : f32 to vector<16x64xf32>
    %12 = arith.addf %11, %10 : vector<16x64xf32>
    %13 = arith.mulf %7, %12 : vector<16x64xf32>
    %cst_8 = arith.constant dense<0.000000e+00> : vector<16xf32>
    %14 = vector.multi_reduction <add>, %13, %cst_8 [1] : vector<16x64xf32> to vector<16xf32>
    %15 = vector.shape_cast %14 : vector<16xf32> to vector<16x1xf32>
    %cst_9 = arith.constant 6.400000e+01 : f32
    %16 = vector.broadcast %cst_9 : f32 to vector<16x1xf32>
    %17 = arith.divf %15, %16 : vector<16x1xf32>
    %18 = vector.broadcast %17 : vector<16x1xf32> to vector<16x64xf32>
    %19 = arith.subf %13, %18 : vector<16x64xf32>
    %20 = arith.mulf %19, %19 : vector<16x64xf32>
    %cst_10 = arith.constant dense<0.000000e+00> : vector<16xf32>
    %21 = vector.multi_reduction <add>, %20, %cst_10 [1] : vector<16x64xf32> to vector<16xf32>
    %22 = vector.shape_cast %21 : vector<16xf32> to vector<16x1xf32>
    %cst_11 = arith.constant 6.400000e+01 : f32
    %23 = vector.broadcast %cst_11 : f32 to vector<16x1xf32>
    %24 = arith.divf %22, %23 : vector<16x1xf32>
    %cst_12 = arith.constant 9.99999996E-13 : f32
    %25 = vector.broadcast %cst_12 : f32 to vector<16x1xf32>
    %26 = arith.addf %24, %25 : vector<16x1xf32>
    %27 = math.rsqrt %26 : vector<16x1xf32>
    %c0_13 = arith.constant 0 : index
    %c0_14 = arith.constant 0 : index
    %28 = vector.load %arg4[%c0_13, %c0_14] : memref<1x64xf32, #tpu.memory_space<vmem>>, vector<1x64xf32>
    %29 = vector.broadcast %28 : vector<1x64xf32> to vector<16x64xf32>
    %30 = arith.mulf %19, %29 : vector<16x64xf32>
    %cst_15 = arith.constant dense<0.000000e+00> : vector<16xf32>
    %31 = vector.multi_reduction <add>, %30, %cst_15 [1] : vector<16x64xf32> to vector<16xf32>
    %32 = vector.shape_cast %31 : vector<16xf32> to vector<16x1xf32>
    %33 = arith.mulf %32, %27 : vector<16x1xf32>
    %c0_16 = arith.constant 0 : index
    %c0_17 = arith.constant 0 : index
    %34 = vector.load %arg5[%c0_16, %c0_17] : memref<1x1xf32, #tpu.memory_space<vmem>>, vector<1x1xf32>
    %35 = vector.broadcast %34 : vector<1x1xf32> to vector<16x1xf32>
    %36 = arith.addf %33, %35 : vector<16x1xf32>
    %c0_18 = arith.constant 0 : index
    %c0_19 = arith.constant 0 : index
    %37 = vector.load %arg6[%c0_18, %c0_19] : memref<16x1xf32, #tpu.memory_space<vmem>>, vector<16x1xf32>
    tpu.vector_store %arg6[%c0_18, %c0_19], %36 {strides = array<i32>} : memref<16x1xf32, #tpu.memory_space<vmem>>, vector<16x1xf32>,
    return
  }
  func.func @transform_0(%arg0: i32) -> (i32, i32) {
    %c0_i32 = arith.constant 0 : i32
    %c0_i32_0 = arith.constant 0 : i32
    return %arg0, %c0_i32 : i32, i32
  }
  func.func @transform_1(%arg0: i32) -> (i32, i32) {
    %c0_i32 = arith.constant 0 : i32
    %c0_i32_0 = arith.constant 0 : i32
    %c0_i32_1 = arith.constant 0 : i32
    return %c0_i32, %c0_i32_0 : i32, i32
  }
  func.func @transform_2(%arg0: i32) -> (i32, i32) {
    %c0_i32 = arith.constant 0 : i32
    %c0_i32_0 = arith.constant 0 : i32
    %c0_i32_1 = arith.constant 0 : i32
    return %c0_i32, %c0_i32_0 : i32, i32
  }
  func.func @transform_3(%arg0: i32) -> (i32, i32) {
    %c0_i32 = arith.constant 0 : i32
    %c0_i32_0 = arith.constant 0 : i32
    %c0_i32_1 = arith.constant 0 : i32
    return %c0_i32, %c0_i32_0 : i32, i32
  }
  func.func @transform_4(%arg0: i32) -> (i32, i32) {
    %c0_i32 = arith.constant 0 : i32
    %c0_i32_0 = arith.constant 0 : i32
    %c0_i32_1 = arith.constant 0 : i32
    return %c0_i32, %c0_i32_0 : i32, i32
  }
  func.func @transform_5(%arg0: i32) -> (i32, i32) {
    %c0_i32 = arith.constant 0 : i32
    %c0_i32_0 = arith.constant 0 : i32
    return %arg0, %c0_i32 : i32, i32
  }
}

module attributes {stable_mosaic.version = 11 : i64} {
  func.func @_source_linear_kernel(%arg0: i32, %arg1: memref<16x32xf32, #tpu.memory_space<vmem>>, %arg2: memref<32x64xf32, #tpu.memory_space<vmem>>, %arg3: memref<1x64xf32, #tpu.memory_space<vmem>>, %arg4: memref<1x64xf32, #tpu.memory_space<vmem>>, %arg5: memref<1x1xf32, #tpu.memory_space<vmem>>, %arg6: memref<16x1xf32, #tpu.memory_space<vmem>>) attributes {dimension_semantics = [#tpu.dimension_semantics<parallel>], iteration_bounds = array<i64: 1>, scalar_prefetch = 0 : i64, scratch_operands = 0 : i64, tpu.core_type = #tpu.core_type<tc>, window_params = [{transform_indices = @transform_0, window_bounds = array<i64: 16, 32>}, {pipeline_mode = #tpu.pipeline_mode<synchronous>, transform_indices = @transform_1, window_bounds = array<i64: 32, 64>}, {pipeline_mode = #tpu.pipeline_mode<synchronous>, transform_indices = @transform_2, window_bounds = array<i64: 1, 64>}, {pipeline_mode = #tpu.pipeline_mode<synchronous>, transform_indices = @transform_3, window_bounds = array<i64: 1, 64>}, {pipeline_mode = #tpu.pipeline_mode<synchronous>, transform_indices = @transform_4, window_bounds = array<i64: 1, 1>}, {transform_indices = @transform_5, window_bounds = array<i64: 16, 1>}]} {
    %c0 = arith.constant 0 : index
    %c0_0 = arith.constant 0 : index
    %0 = vector.load %arg1[%c0, %c0_0] : memref<16x32xf32, #tpu.memory_space<vmem>>, vector<16x32xf32>
    %c0_1 = arith.constant 0 : index
    %c0_2 = arith.constant 0 : index
    %1 = vector.load %arg2[%c0_1, %c0_2] : memref<32x64xf32, #tpu.memory_space<vmem>>, vector<32x64xf32>
    %cst = arith.constant dense<0.000000e+00> : vector<16x64xf32>
    %2 = tpu.matmul %0, %1, %cst {dimension_numbers = #tpu.dot_dimension_numbers<[1], [0], [0], [1], [0, 0, 1, 1], [], []>} : vector<16x32xf32>, vector<32x64xf32>, vector<16x64xf32> -> vector<16x64xf32>
    %c0_3 = arith.constant 0 : index
    %c0_4 = arith.constant 0 : index
    %3 = vector.load %arg3[%c0_3, %c0_4] : memref<1x64xf32, #tpu.memory_space<vmem>>, vector<1x64xf32>
    %4 = vector.broadcast %3 : vector<1x64xf32> to vector<16x64xf32>
    %5 = arith.addf %2, %4 : vector<16x64xf32>
    %cst_5 = arith.constant 5.000000e-01 : f32
    %6 = vector.broadcast %cst_5 : f32 to vector<16x64xf32>
    %7 = arith.mulf %5, %6 : vector<16x64xf32>
    %cst_6 = arith.constant 0.707106769 : f32
    %8 = vector.broadcast %cst_6 : f32 to vector<16x64xf32>
    %9 = arith.mulf %5, %8 : vector<16x64xf32>
    %10 = math.erf %9 : vector<16x64xf32>
    %cst_7 = arith.constant 1.000000e+00 : f32
    %11 = vector.broadcast %cst_7 : f32 to vector<16x64xf32>
    %12 = arith.addf %11, %10 : vector<16x64xf32>
    %13 = arith.mulf %7, %12 : vector<16x64xf32>
    %cst_8 = arith.constant dense<0.000000e+00> : vector<16xf32>
    %14 = vector.multi_reduction <add>, %13, %cst_8 [1] : vector<16x64xf32> to vector<16xf32>
    %15 = vector.shape_cast %14 : vector<16xf32> to vector<16x1xf32>
    %cst_9 = arith.constant 6.400000e+01 : f32
    %16 = vector.broadcast %cst_9 : f32 to vector<16x1xf32>
    %17 = arith.divf %15, %16 : vector<16x1xf32>
    %18 = vector.broadcast %17 : vector<16x1xf32> to vector<16x64xf32>
    %19 = arith.subf %13, %18 : vector<16x64xf32>
    %20 = arith.mulf %19, %19 : vector<16x64xf32>
    %cst_10 = arith.constant dense<0.000000e+00> : vector<16xf32>
    %21 = vector.multi_reduction <add>, %20, %cst_10 [1] : vector<16x64xf32> to vector<16xf32>
    %22 = vector.shape_cast %21 : vector<16xf32> to vector<16x1xf32>
    %cst_11 = arith.constant 6.400000e+01 : f32
    %23 = vector.broadcast %cst_11 : f32 to vector<16x1xf32>
    %24 = arith.divf %22, %23 : vector<16x1xf32>
    %cst_12 = arith.constant 9.99999996E-13 : f32
    %25 = vector.broadcast %cst_12 : f32 to vector<16x1xf32>
    %26 = arith.addf %24, %25 : vector<16x1xf32>
    %27 = math.rsqrt %26 : vector<16x1xf32>
    %c0_13 = arith.constant 0 : index
    %c0_14 = arith.constant 0 : index
    %28 = vector.load %arg4[%c0_13, %c0_14] : memref<1x64xf32, #tpu.memory_space<vmem>>, vector<1x64xf32>
    %29 = vector.broadcast %28 : vector<1x64xf32> to vector<16x64xf32>
    %30 = arith.mulf %19, %29 : vector<16x64xf32>
    %cst_15 = arith.constant dense<0.000000e+00> : vector<16xf32>
    %31 = vector.multi_reduction <add>, %30, %cst_15 [1] : vector<16x64xf32> to vector<16xf32>
    %32 = vector.shape_cast %31 : vector<16xf32> to vector<16x1xf32>
    %33 = arith.mulf %32, %27 : vector<16x1xf32>
    %c0_16 = arith.constant 0 : index
    %c0_17 = arith.constant 0 : index
    %34 = vector.load %arg5[%c0_16, %c0_17] : memref<1x1xf32, #tpu.memory_space<vmem>>, vector<1x1xf32>
    %35 = vector.broadcast %34 : vector<1x1xf32> to vector<16x1xf32>
    %36 = arith.addf %33, %35 : vector<16x1xf32>
    %c0_18 = arith.constant 0 : index
    %c0_19 = arith.constant 0 : index
    %37 = vector.load %arg6[%c0_18, %c0_19] : memref<16x1xf32, #tpu.memory_space<vmem>>, vector<16x1xf32>
    tpu.vector_store %arg6[%c0_18, %c0_19], %36 {strides = array<i32>} : memref<16x1xf32, #tpu.memory_space<vmem>>, vector<16x1xf32>,
    return
  }
  func.func @transform_0(%arg0: i32) -> (i32, i32) {
    %c0_i32 = arith.constant 0 : i32
    %c0_i32_0 = arith.constant 0 : i32
    return %arg0, %c0_i32 : i32, i32
  }
  func.func @transform_1(%arg0: i32) -> (i32, i32) {
    %c0_i32 = arith.constant 0 : i32
    %c0_i32_0 = arith.constant 0 : i32
    %c0_i32_1 = arith.constant 0 : i32
    return %c0_i32, %c0_i32_0 : i32, i32
  }
  func.func @transform_2(%arg0: i32) -> (i32, i32) {
    %c0_i32 = arith.constant 0 : i32
    %c0_i32_0 = arith.constant 0 : i32
    %c0_i32_1 = arith.constant 0 : i32
    return %c0_i32, %c0_i32_0 : i32, i32
  }
  func.func @transform_3(%arg0: i32) -> (i32, i32) {
    %c0_i32 = arith.constant 0 : i32
    %c0_i32_0 = arith.constant 0 : i32
    %c0_i32_1 = arith.constant 0 : i32
    return %c0_i32, %c0_i32_0 : i32, i32
  }
  func.func @transform_4(%arg0: i32) -> (i32, i32) {
    %c0_i32 = arith.constant 0 : i32
    %c0_i32_0 = arith.constant 0 : i32
    %c0_i32_1 = arith.constant 0 : i32
    return %c0_i32, %c0_i32_0 : i32, i32
  }
  func.func @transform_5(%arg0: i32) -> (i32, i32) {
    %c0_i32 = arith.constant 0 : i32
    %c0_i32_0 = arith.constant 0 : i32
    return %arg0, %c0_i32 : i32, i32
  }
}

</mosaic_0001>

<bundles_post_ra>
// kernel: tpu_custom_call.1
= control target key start
LH: loop header
LB: loop body
LE: loop exit
PB: predicated region body
PF: predicated region fallthrough
CT: control target
= control target key end

     0   :  { %s419_s0 = inlined_call_operand.hbm [shape: f32[16,32], index: 0, kind: input, shape index: {}]   ;;  %s420_s1 = inlined_call_operand.hbm [shape: f32[32,64], index: 1, kind: input, shape index: {}]   ;;  %s421_s2 = inlined_call_operand.vmem [shape: f32[1,64], index: 2, kind: input, shape index: {}]   ;;  %s422_s3 = inlined_call_operand.vmem [shape: f32[1,64], index: 3, kind: input, shape index: {}]   ;;  %s423_s4 = inlined_call_operand.<no memory space> [shape: f32[1,1], index: 4, kind: input, shape index: {}]   ;;  %s424_s5 = inlined_call_operand.vmem [shape: f32[16,1], index: 5, kind: output, shape index: {}]  }
   0x1   :  { %v10_v0 = vstv %s423_s4 }
   0x2   :  { %11 = vst [vmem:[#allocation2] sm:$0x1] %v10_v0 }
   0x3   :  { %12 = vsyncpa [#allocation4], 0  ;;  %s18_s22 = sshll.u32 %s419_s0, 4  ;;  %s19_s22 = int_to_ptr.hbm [resolvable:$true] %s18_s22 }
   0x4   :  { %13 = vsyncpa [#allocation6], 0  ;;  %s339_s23 = smov [#allocation3]   ;;  %s31_s27 = sshll.u32 %s420_s1, 4  ;;  %s32_s27 = int_to_ptr.hbm [resolvable:$true] %s31_s27 }
   0x5   :  { %s20_s24 = sshll.u32 %s339_s23, 4  ;;  %s340_s28 = smov 128   ;;  %s21_s24 = int_to_ptr.vmem [resolvable:$true] %s20_s24 }
   0x6   :  { %s341_s29 = smov 8   ;;  %s342_s4 = smov [#allocation5]  }
   0x7   :  { %26 = dma.hbm_to_vmem [thread:$0]  %s19_s22, 256, %s21_s24, [#allocation4], %s340_s28, %s340_s28, %s341_s29  }
   0x8   :  { %s33_s30 = sshll.u32 %s342_s4, 4  ;;  %s34_s30 = int_to_ptr.vmem [resolvable:$true] %s33_s30 }
   0x9   :  { %39 = dma.hbm_to_vmem [thread:$0]  %s32_s27, 512, %s34_s30, [#allocation6], %s340_s28, %s340_s28, %s341_s29  }
   0xa   :  { %335 = dma.done.wait [#allocation4], 256  }
   0xb   :  { %336 = vsyncadd [#allocation4], 4294967040 }
   0xc   :  { %337 = dma.done.wait [#allocation6], 512  }
   0xd   :  { %338 = vsyncadd [#allocation6], 4294966784  ;;  %v59_v1 = vld [vmem:[#allocation5 + $0x18] sm:$0xff]  ;;  %v58_v2 = vld [vmem:[#allocation5 + $0x10] sm:$0xff]  ;;  %vm64_vm0 = vcmask 261120   ;;  %vm182_vm9 = vcmask 523264  }
   0xe   :  { %83 = vmatpush.msra.mxu0 %v59_v1  ;;  %265 = vmatpush.msra.mxu1 %v59_v1  ;;  %v57_v3 = vld [vmem:[#allocation5 + $0x8] sm:$0xff]  ;;  %v56_v4 = vld [vmem:[#allocation5] sm:$0xff]  ;;  %v54_v5 = vld [vmem:[#allocation3] sm:$0xff]  ;;  %vm252_vm14 = vcmask 7168  }
   0xf   :  { %v55_v6 = vld [vmem:[#allocation3 + $0x8] sm:$0xff]  ;;  %v274_v7 = vld [vmem:[%s421_s2] ss:$0 sm:$0xff] }
  0x10   :  { %84 = vmatpush.msra.mxu0 %v58_v2  ;;  %266 = vmatpush.msra.mxu1 %v58_v2 }
  0x12   :  { %85 = vmatpush.msra.mxu0 %v57_v3  ;;  %267 = vmatpush.msra.mxu1 %v57_v3 }
  0x14   :  { %86 = vmatpush.msra.mxu0 %v56_v4  ;;  %268 = vmatpush.msra.mxu1 %v56_v4 }
  0x15   :  { %261 = vmatmul.msk.f32.vlgmr.msra.gmra.mxu0 %vm64_vm0, %v54_v5  ;;  %262 = vmatmul.msk.f32.vlgmr.msra.gmra.mxu1 %vm64_vm0, %v55_v6 }
  0x92   :  { %v88_v8 = vpop.f32.mrf.mxu0  ;;  %v91_v9 = vpop.f32.mrf.mxu1 }
  0x93   :  { %v386_v10 = vadd.f32 %v274_v7, %v88_v8  ;;  %v388_v11 = vadd.f32 %v274_v7, %v91_v9 }
  0x95   :  { %v391_v12 = vmul.f32 0.70710677, %v386_v10  ;;  %v394_v13 = vmul.f32 0.70710677, %v388_v11 }
  0x97   :  { %v98_v14 = vmul.f32 %v391_v12, %v391_v12  ;;  %v138_v15 = vmul.f32 %v394_v13, %v394_v13 }
  0x99   :  { %v99_v16 = vmin.f32 %v98_v14, 16.0  ;;  %v139_v17 = vmin.f32 %v138_v15, 16.0 }
  0x9b   :  { %v100_v18 = vmul.f32 2.1237322e-06, %v99_v16  ;;  %v140_v19 = vmul.f32 2.1237322e-06, %v139_v17  ;;  %v111_v20 = vmul.f32 3.8918573e-05, %v99_v16 }
  0x9c   :  { %v151_v21 = vmul.f32 3.8918573e-05, %v139_v17 }
  0x9d   :  { %v101_v22 = vadd.f32 0.00028619796, %v100_v18  ;;  %v141_v23 = vadd.f32 0.00028619796, %v140_v19  ;;  %v112_v24 = vadd.f32 0.001143296, %v111_v20 }
  0x9e   :  { %v152_v25 = vadd.f32 0.001143296, %v151_v21 }
  0x9f   :  { %v102_v26 = vmul.f32 %v101_v22, %v99_v16  ;;  %v142_v27 = vmul.f32 %v141_v23, %v139_v17  ;;  %v113_v28 = vmul.f32 %v112_v24, %v99_v16  ;;  %v94_v23 = vmul.f32 0.5, %v386_v10 }
  0xa0   :  { %v153_v29 = vmul.f32 %v152_v25, %v139_v17 }
  0xa1   :  { %v103_v30 = vadd.f32 0.0036580483, %v102_v26  ;;  %v114_v31 = vadd.f32 0.014752088, %v113_v28  ;;  %v143_v33 = vadd.f32 0.0036580483, %v142_v27 }
  0xa2   :  { %v154_v32 = vadd.f32 0.014752088, %v153_v29  ;;  %v95_v28 = vmul.f32 0.5, %v388_v11 }
  0xa3   :  { %v115_v34 = vmul.f32 %v114_v31, %v99_v16  ;;  %v104_v36 = vmul.f32 %v103_v30, %v99_v16  ;;  %v144_v39 = vmul.f32 %v143_v33, %v139_v17  ;;  %v343_v30 = vmov 64.0  }
  0xa4   :  { %v155_v35 = vmul.f32 %v154_v32, %v139_v17 }
  0xa5   :  { %v116_v37 = vadd.f32 0.112945676, %v115_v34  ;;  %v105_v42 = vadd.f32 0.05243302, %v104_v36  ;;  %v145_v45 = vadd.f32 0.05243302, %v144_v39 }
  0xa6   :  { %v156_v38 = vadd.f32 0.112945676, %v155_v35 }
  0xa7   :  { %v117_v40 = vmul.f32 %v116_v37, %v99_v16  ;;  %v106_v48 = vmul.f32 %v105_v42, %v99_v16  ;;  %v146_v51 = vmul.f32 %v145_v45, %v139_v17 }
  0xa8   :  { %v157_v41 = vmul.f32 %v156_v38, %v139_v17  ;;  %v275_v38 = vld [vmem:[%s422_s3] ss:$0 sm:$0xff] }
  0xa9   :  { %v118_v43 = vadd.f32 0.4994258, %v117_v40  ;;  %v107_v52 = vadd.f32 0.18741608, %v106_v48  ;;  %v147_v53 = vadd.f32 0.18741608, %v146_v51 }
  0xaa   :  { %v158_v44 = vadd.f32 0.4994258, %v157_v41 }
  0xab   :  { %v119_v46 = vmul.f32 %v118_v43, %v99_v16  ;;  %v108_v55 = vmul.f32 %v107_v52, %v99_v16  ;;  %v148_v58 = vmul.f32 %v147_v53, %v139_v17 }
  0xac   :  { %v159_v47 = vmul.f32 %v158_v44, %v139_v17 }
  0xad   :  { %v120_v49 = vadd.f32 1.0, %v119_v46  ;;  %v109_v61 = vadd.f32 1.1283791, %v108_v55  ;;  %v149_v3 = vadd.f32 1.1283791, %v148_v58 }
  0xae   :  { %v160_v50 = vadd.f32 1.0, %v159_v47 }
  0xaf   :  { %277 = vrcp.f32 %v120_v49  ;;  %v132_v62 = vand.u32 2147483648, %v120_v49  ;;  %v130_v1 = vand.u32 2147483647, %v120_v49  ;;  %vm126_vm3 = vweird.f32 %v120_v49 }
  0xb0   :  { %279 = vrcp.f32 %v160_v50  ;;  %v172_v2 = vand.u32 2147483648, %v160_v50  ;;  %v170_v5 = vand.u32 2147483647, %v160_v50  ;;  %vm166_vm5 = vweird.f32 %v160_v50 }
  0xb1   :  { %v133_v7 = vor.u32 1.1754944e-38, %v132_v62  ;;  %v110_v9 = vmul.f32 %v109_v61, %v391_v12  ;;  %vm131_vm6 = vcmp.eq.f32.partialorder %v130_v1, 8.507059e+37  ;;  %v150_v16 = vmul.f32 %v149_v3, %v394_v13  ;;  %v276_v1 = vld [vmem:[#allocation2] ss:$0 sm:$0xff] }
  0xb2   :  { %v173_v15 = vor.u32 1.1754944e-38, %v172_v2  ;;  %vm171_vm8 = vcmp.eq.f32.partialorder %v170_v5, 8.507059e+37  ;;  %281 = vrcp.f32 %v343_v30 }
  0xb5   :  { %v278_v54 = vpop.eup %277 }
  0xb6   :  { %v280_v56 = vpop.eup %279  ;;  %v122_v57 = vmul.f32 %v278_v54, %v120_v49  ;;  %vm127_vm1 = vweird.f32 %v278_v54 }
  0xb7   :  { %v162_v59 = vmul.f32 %v280_v56, %v160_v50  ;;  %vm167_vm2 = vweird.f32 %v280_v56  ;;  %vm128_vm4 = vmor %vm126_vm3, %vm127_vm1 }
  0xb8   :  { %v123_v60 = vsub.f32 1.0, %v122_v57  ;;  %vm168_vm7 = vmor %vm166_vm5, %vm167_vm2  ;;  %v282_v31 = vpop.eup %281 }
  0xb9   :  { %v163_v63 = vsub.f32 1.0, %v162_v59  ;;  %v190_v32 = vmul.f32 64.0, %v282_v31  ;;  %vm194_vm10 = vweird.f32 %v282_v31 }
  0xba   :  { %v124_v0 = vmul.f32 %v278_v54, %v123_v60 }
  0xbb   :  { %v164_v4 = vmul.f32 %v280_v56, %v163_v63  ;;  %v191_v33 = vsub.f32 1.0, %v190_v32 }
  0xbc   :  { %v125_v6 = vadd.f32 %v278_v54, %v124_v0 }
  0xbd   :  { %v165_v8 = vadd.f32 %v280_v56, %v164_v4  ;;  %v192_v10 = vmul.f32 %v282_v31, %v191_v33 }
  0xbe   :  { %v129_v14 = vsel %vm128_vm4, %v278_v54, %v125_v6 }
  0xbf   :  { %v134_v17 = vsel %vm131_vm6, %v133_v7, %v129_v14  ;;  %v169_v18 = vsel %vm168_vm7, %v280_v56, %v165_v8  ;;  %v193_v34 = vadd.f32 %v282_v31, %v192_v10 }
  0xc0   :  { %v135_v19 = vmul.f32 %v134_v17, %v110_v9  ;;  %v174_v20 = vsel %vm171_vm8, %v173_v15, %v169_v18 }
  0xc1   :  { %v175_v21 = vmul.f32 %v174_v20, %v150_v16  ;;  %v195_v35 = vsel %vm194_vm10, %v282_v31, %v193_v34 }
  0xc2   :  { %v263_v22 = vclamps-f32 %v135_v19, 1.0 }
  0xc3   :  { %v264_v25 = vclamps-f32 %v175_v21, 1.0 }
  0xc4   :  { %v178_v24 = vadd.f32 1.0, %v263_v22 }
  0xc5   :  { %v179_v27 = vadd.f32 1.0, %v264_v25 }
  0xc6   :  { %v180_v26 = vmul.f32 %v178_v24, %v94_v23 }
  0xc7   :  { %v181_v13 = vmul.f32 %v179_v27, %v95_v28 }
  0xc8   :  { %v183_v12 = vsel %vm182_vm9, %v180_v26, 0.0 }
  0xc9   :  { %184 = vadd.xlane.f32.xlu0 %v183_v12  ;;  %v186_v29 = vsel %vm182_vm9, %v181_v13, 0.0 }
  0xd1   :  { %187 = vadd.xlane.f32.xlu0 %v186_v29 }
 0x13c   :  { %v185_v36 = vpop.xlane.xlu0 %184 }
 0x13d   :  { %v196_v37 = vmul.f32 %v195_v35, %v185_v36 }
 0x13f   :  { %v198_v11 = vsub.f32 %v180_v26, %v196_v37 }
 0x141   :  { %v236_v39 = vmul.f32 %v275_v38, %v198_v11  ;;  %v200_v40 = vmul.f32 %v198_v11, %v198_v11 }
 0x143   :  { %v238_v41 = vsel %vm182_vm9, %v236_v39, 0.0  ;;  %v202_v42 = vsel %vm182_vm9, %v200_v40, 0.0 }
 0x144   :  { %239 = vadd.xlane.f32.xlu2 %v238_v41  ;;  %203 = vadd.xlane.f32.xlu1 %v202_v42  ;;  %v188_v43 = vpop.xlane.xlu0 %187 }
 0x145   :  { %v197_v44 = vmul.f32 %v195_v35, %v188_v43 }
 0x147   :  { %v199_v45 = vsub.f32 %v181_v13, %v197_v44 }
 0x149   :  { %v237_v46 = vmul.f32 %v275_v38, %v199_v45  ;;  %v201_v47 = vmul.f32 %v199_v45, %v199_v45 }
 0x14b   :  { %v241_v48 = vsel %vm182_vm9, %v237_v46, 0.0  ;;  %v205_v49 = vsel %vm182_vm9, %v201_v47, 0.0 }
 0x14c   :  { %242 = vadd.xlane.f32.xlu2 %v241_v48  ;;  %206 = vadd.xlane.f32.xlu1 %v205_v49 }
 0x1b7   :  { %v204_v50 = vpop.xlane.xlu1 %203  ;;  %v240_v62 = vpop.xlane.xlu2 %239 }
 0x1b8   :  { %v208_v51 = vmul.f32 %v204_v50, %v195_v35 }
 0x1ba   :  { %v210_v52 = vadd.f32 1e-12, %v208_v51 }
 0x1bc   :  { %283 = vrsqrt.f32 %v210_v52  ;;  %vm218_vm12 = vweird.f32 %v210_v52 }
 0x1bf   :  { %v207_v53 = vpop.xlane.xlu1 %206  ;;  %v243_v9 = vpop.xlane.xlu2 %242 }
 0x1c0   :  { %v209_v54 = vmul.f32 %v207_v53, %v195_v35 }
 0x1c2   :  { %v284_v55 = vpop.eup %283  ;;  %v211_v56 = vadd.f32 1e-12, %v209_v54 }
 0x1c3   :  { %v213_v57 = vmul.f32 %v284_v55, %v210_v52  ;;  %vm219_vm11 = vweird.f32 %v284_v55 }
 0x1c4   :  { %285 = vrsqrt.f32 %v211_v56  ;;  %vm220_vm13 = vmor %vm218_vm12, %vm219_vm11  ;;  %vm228_vm0 = vweird.f32 %v211_v56 }
 0x1c5   :  { %v214_v58 = vmul.f32 %v284_v55, %v213_v57 }
 0x1c7   :  { %v215_v59 = vmul.f32 0.5, %v214_v58 }
 0x1c9   :  { %v216_v60 = vsub.f32 1.5, %v215_v59 }
 0x1ca   :  { %v286_v61 = vpop.eup %285 }
 0x1cb   :  { %v217_v63 = vmul.f32 %v284_v55, %v216_v60  ;;  %v223_v0 = vmul.f32 %v286_v61, %v211_v56  ;;  %vm229_vm15 = vweird.f32 %v286_v61 }
 0x1cc   :  { %vm230_vm1 = vmor %vm228_vm0, %vm229_vm15 }
 0x1cd   :  { %v221_v2 = vsel %vm220_vm13, %v284_v55, %v217_v63  ;;  %v224_v3 = vmul.f32 %v286_v61, %v223_v0 }
 0x1ce   :  { %v244_v4 = vmul.f32 %v240_v62, %v221_v2 }
 0x1cf   :  { %v225_v5 = vmul.f32 0.5, %v224_v3 }
 0x1d0   :  { %v250_v6 = vadd.f32 %v276_v1, %v244_v4 }
 0x1d1   :  { %v226_v7 = vsub.f32 1.5, %v225_v5 }
 0x1d2   :  { %253 = vst.msk [vmem:[%s424_s5] sm:$0xff] %vm252_vm14, %v250_v6 }
 0x1d3   :  { %v227_v8 = vmul.f32 %v286_v61, %v226_v7 }
 0x1d5   :  { %v231_v14 = vsel %vm230_vm1, %v286_v61, %v227_v8 }
 0x1d6   :  { %v245_v15 = vmul.f32 %v243_v9, %v231_v14 }
 0x1d8   :  { %v251_v16 = vadd.f32 %v276_v1, %v245_v15 }
 0x1da   :  { %254 = vst.msk [vmem:[%s424_s5 + $0x8] sm:$0xff] %vm252_vm14, %v251_v16 }
 0x1db   :  { %259 = vsyncpa [#allocation4], 1 }
 0x1dc   :  { %260 = vsyncpa [#allocation6], 1 }

// kernel: tpu_custom_call.1
= control target key start
LH: loop header
LB: loop body
LE: loop exit
PB: predicated region body
PF: predicated region fallthrough
CT: control target
= control target key end

     0   :  { %s419_s0 = inlined_call_operand.hbm [shape: f32[16,32], index: 0, kind: input, shape index: {}]   ;;  %s420_s1 = inlined_call_operand.hbm [shape: f32[32,64], index: 1, kind: input, shape index: {}]   ;;  %s421_s2 = inlined_call_operand.vmem [shape: f32[1,64], index: 2, kind: input, shape index: {}]   ;;  %s422_s3 = inlined_call_operand.vmem [shape: f32[1,64], index: 3, kind: input, shape index: {}]   ;;  %s423_s4 = inlined_call_operand.<no memory space> [shape: f32[1,1], index: 4, kind: input, shape index: {}]   ;;  %s424_s5 = inlined_call_operand.vmem [shape: f32[16,1], index: 5, kind: output, shape index: {}]  }
   0x1   :  { %v10_v0 = vstv %s423_s4 }
   0x2   :  { %11 = vst [vmem:[#allocation2] sm:$0x1] %v10_v0 }
   0x3   :  { %12 = vsyncpa [#allocation4], 0  ;;  %s18_s22 = sshll.u32 %s419_s0, 4  ;;  %s19_s22 = int_to_ptr.hbm [resolvable:$true] %s18_s22 }
   0x4   :  { %13 = vsyncpa [#allocation6], 0  ;;  %s339_s23 = smov [#allocation3]   ;;  %s31_s27 = sshll.u32 %s420_s1, 4  ;;  %s32_s27 = int_to_ptr.hbm [resolvable:$true] %s31_s27 }
   0x5   :  { %s20_s24 = sshll.u32 %s339_s23, 4  ;;  %s340_s28 = smov 128   ;;  %s21_s24 = int_to_ptr.vmem [resolvable:$true] %s20_s24 }
   0x6   :  { %s341_s29 = smov 8   ;;  %s342_s4 = smov [#allocation5]  }
   0x7   :  { %26 = dma.hbm_to_vmem [thread:$0]  %s19_s22, 256, %s21_s24, [#allocation4], %s340_s28, %s340_s28, %s341_s29  }
   0x8   :  { %s33_s30 = sshll.u32 %s342_s4, 4  ;;  %s34_s30 = int_to_ptr.vmem [resolvable:$true] %s33_s30 }
   0x9   :  { %39 = dma.hbm_to_vmem [thread:$0]  %s32_s27, 512, %s34_s30, [#allocation6], %s340_s28, %s340_s28, %s341_s29  }
   0xa   :  { %335 = dma.done.wait [#allocation4], 256  }
   0xb   :  { %336 = vsyncadd [#allocation4], 4294967040 }
   0xc   :  { %337 = dma.done.wait [#allocation6], 512  }
   0xd   :  { %338 = vsyncadd [#allocation6], 4294966784  ;;  %v59_v1 = vld [vmem:[#allocation5 + $0x18] sm:$0xff]  ;;  %v58_v2 = vld [vmem:[#allocation5 + $0x10] sm:$0xff]  ;;  %vm64_vm0 = vcmask 261120   ;;  %vm182_vm9 = vcmask 523264  }
   0xe   :  { %83 = vmatpush.msra.mxu0 %v59_v1  ;;  %265 = vmatpush.msra.mxu1 %v59_v1  ;;  %v57_v3 = vld [vmem:[#allocation5 + $0x8] sm:$0xff]  ;;  %v56_v4 = vld [vmem:[#allocation5] sm:$0xff]  ;;  %v54_v5 = vld [vmem:[#allocation3] sm:$0xff]  ;;  %vm252_vm14 = vcmask 7168  }
   0xf   :  { %v55_v6 = vld [vmem:[#allocation3 + $0x8] sm:$0xff]  ;;  %v274_v7 = vld [vmem:[%s421_s2] ss:$0 sm:$0xff] }
  0x10   :  { %84 = vmatpush.msra.mxu0 %v58_v2  ;;  %266 = vmatpush.msra.mxu1 %v58_v2 }
  0x12   :  { %85 = vmatpush.msra.mxu0 %v57_v3  ;;  %267 = vmatpush.msra.mxu1 %v57_v3 }
  0x14   :  { %86 = vmatpush.msra.mxu0 %v56_v4  ;;  %268 = vmatpush.msra.mxu1 %v56_v4 }
  0x15   :  { %261 = vmatmul.msk.f32.vlgmr.msra.gmra.mxu0 %vm64_vm0, %v54_v5  ;;  %262 = vmatmul.msk.f32.vlgmr.msra.gmra.mxu1 %vm64_vm0, %v55_v6 }
  0x92   :  { %v88_v8 = vpop.f32.mrf.mxu0  ;;  %v91_v9 = vpop.f32.mrf.mxu1 }
  0x93   :  { %v386_v10 = vadd.f32 %v274_v7, %v88_v8  ;;  %v388_v11 = vadd.f32 %v274_v7, %v91_v9 }
  0x95   :  { %v391_v12 = vmul.f32 0.70710677, %v386_v10  ;;  %v394_v13 = vmul.f32 0.70710677, %v388_v11 }
  0x97   :  { %v98_v14 = vmul.f32 %v391_v12, %v391_v12  ;;  %v138_v15 = vmul.f32 %v394_v13, %v394_v13 }
  0x99   :  { %v99_v16 = vmin.f32 %v98_v14, 16.0  ;;  %v139_v17 = vmin.f32 %v138_v15, 16.0 }
  0x9b   :  { %v100_v18 = vmul.f32 2.1237322e-06, %v99_v16  ;;  %v140_v19 = vmul.f32 2.1237322e-06, %v139_v17  ;;  %v111_v20 = vmul.f32 3.8918573e-05, %v99_v16 }
  0x9c   :  { %v151_v21 = vmul.f32 3.8918573e-05, %v139_v17 }
  0x9d   :  { %v101_v22 = vadd.f32 0.00028619796, %v100_v18  ;;  %v141_v23 = vadd.f32 0.00028619796, %v140_v19  ;;  %v112_v24 = vadd.f32 0.001143296, %v111_v20 }
  0x9e   :  { %v152_v25 = vadd.f32 0.001143296, %v151_v21 }
  0x9f   :  { %v102_v26 = vmul.f32 %v101_v22, %v99_v16  ;;  %v142_v27 = vmul.f32 %v141_v23, %v139_v17  ;;  %v113_v28 = vmul.f32 %v112_v24, %v99_v16  ;;  %v94_v23 = vmul.f32 0.5, %v386_v10 }
  0xa0   :  { %v153_v29 = vmul.f32 %v152_v25, %v139_v17 }
  0xa1   :  { %v103_v30 = vadd.f32 0.0036580483, %v102_v26  ;;  %v114_v31 = vadd.f32 0.014752088, %v113_v28  ;;  %v143_v33 = vadd.f32 0.0036580483, %v142_v27 }
  0xa2   :  { %v154_v32 = vadd.f32 0.014752088, %v153_v29  ;;  %v95_v28 = vmul.f32 0.5, %v388_v11 }
  0xa3   :  { %v115_v34 = vmul.f32 %v114_v31, %v99_v16  ;;  %v104_v36 = vmul.f32 %v103_v30, %v99_v16  ;;  %v144_v39 = vmul.f32 %v143_v33, %v139_v17  ;;  %v343_v30 = vmov 64.0  }
  0xa4   :  { %v155_v35 = vmul.f32 %v154_v32, %v139_v17 }
  0xa5   :  { %v116_v37 = vadd.f32 0.112945676, %v115_v34  ;;  %v105_v42 = vadd.f32 0.05243302, %v104_v36  ;;  %v145_v45 = vadd.f32 0.05243302, %v144_v39 }
  0xa6   :  { %v156_v38 = vadd.f32 0.112945676, %v155_v35 }
  0xa7   :  { %v117_v40 = vmul.f32 %v116_v37, %v99_v16  ;;  %v106_v48 = vmul.f32 %v105_v42, %v99_v16  ;;  %v146_v51 = vmul.f32 %v145_v45, %v139_v17 }
  0xa8   :  { %v157_v41 = vmul.f32 %v156_v38, %v139_v17  ;;  %v275_v38 = vld [vmem:[%s422_s3] ss:$0 sm:$0xff] }
  0xa9   :  { %v118_v43 = vadd.f32 0.4994258, %v117_v40  ;;  %v107_v52 = vadd.f32 0.18741608, %v106_v48  ;;  %v147_v53 = vadd.f32 0.18741608, %v146_v51 }
  0xaa   :  { %v158_v44 = vadd.f32 0.4994258, %v157_v41 }
  0xab   :  { %v119_v46 = vmul.f32 %v118_v43, %v99_v16  ;;  %v108_v55 = vmul.f32 %v107_v52, %v99_v16  ;;  %v148_v58 = vmul.f32 %v147_v53, %v139_v17 }
  0xac   :  { %v159_v47 = vmul.f32 %v158_v44, %v139_v17 }
  0xad   :  { %v120_v49 = vadd.f32 1.0, %v119_v46  ;;  %v109_v61 = vadd.f32 1.1283791, %v108_v55  ;;  %v149_v3 = vadd.f32 1.1283791, %v148_v58 }
  0xae   :  { %v160_v50 = vadd.f32 1.0, %v159_v47 }
  0xaf   :  { %277 = vrcp.f32 %v120_v49  ;;  %v132_v62 = vand.u32 2147483648, %v120_v49  ;;  %v130_v1 = vand.u32 2147483647, %v120_v49  ;;  %vm126_vm3 = vweird.f32 %v120_v49 }
  0xb0   :  { %279 = vrcp.f32 %v160_v50  ;;  %v172_v2 = vand.u32 2147483648, %v160_v50  ;;  %v170_v5 = vand.u32 2147483647, %v160_v50  ;;  %vm166_vm5 = vweird.f32 %v160_v50 }
  0xb1   :  { %v133_v7 = vor.u32 1.1754944e-38, %v132_v62  ;;  %v110_v9 = vmul.f32 %v109_v61, %v391_v12  ;;  %vm131_vm6 = vcmp.eq.f32.partialorder %v130_v1, 8.507059e+37  ;;  %v150_v16 = vmul.f32 %v149_v3, %v394_v13  ;;  %v276_v1 = vld [vmem:[#allocation2] ss:$0 sm:$0xff] }
  0xb2   :  { %v173_v15 = vor.u32 1.1754944e-38, %v172_v2  ;;  %vm171_vm8 = vcmp.eq.f32.partialorder %v170_v5, 8.507059e+37  ;;  %281 = vrcp.f32 %v343_v30 }
  0xb5   :  { %v278_v54 = vpop.eup %277 }
  0xb6   :  { %v280_v56 = vpop.eup %279  ;;  %v122_v57 = vmul.f32 %v278_v54, %v120_v49  ;;  %vm127_vm1 = vweird.f32 %v278_v54 }
  0xb7   :  { %v162_v59 = vmul.f32 %v280_v56, %v160_v50  ;;  %vm167_vm2 = vweird.f32 %v280_v56  ;;  %vm128_vm4 = vmor %vm126_vm3, %vm127_vm1 }
  0xb8   :  { %v123_v60 = vsub.f32 1.0, %v122_v57  ;;  %vm168_vm7 = vmor %vm166_vm5, %vm167_vm2  ;;  %v282_v31 = vpop.eup %281 }
  0xb9   :  { %v163_v63 = vsub.f32 1.0, %v162_v59  ;;  %v190_v32 = vmul.f32 64.0, %v282_v31  ;;  %vm194_vm10 = vweird.f32 %v282_v31 }
  0xba   :  { %v124_v0 = vmul.f32 %v278_v54, %v123_v60 }
  0xbb   :  { %v164_v4 = vmul.f32 %v280_v56, %v163_v63  ;;  %v191_v33 = vsub.f32 1.0, %v190_v32 }
  0xbc   :  { %v125_v6 = vadd.f32 %v278_v54, %v124_v0 }
  0xbd   :  { %v165_v8 = vadd.f32 %v280_v56, %v164_v4  ;;  %v192_v10 = vmul.f32 %v282_v31, %v191_v33 }
  0xbe   :  { %v129_v14 = vsel %vm128_vm4, %v278_v54, %v125_v6 }
  0xbf   :  { %v134_v17 = vsel %vm131_vm6, %v133_v7, %v129_v14  ;;  %v169_v18 = vsel %vm168_vm7, %v280_v56, %v165_v8  ;;  %v193_v34 = vadd.f32 %v282_v31, %v192_v10 }
  0xc0   :  { %v135_v19 = vmul.f32 %v134_v17, %v110_v9  ;;  %v174_v20 = vsel %vm171_vm8, %v173_v15, %v169_v18 }
  0xc1   :  { %v175_v21 = vmul.f32 %v174_v20, %v150_v16  ;;  %v195_v35 = vsel %vm194_vm10, %v282_v31, %v193_v34 }
  0xc2   :  { %v263_v22 = vclamps-f32 %v135_v19, 1.0 }
  0xc3   :  { %v264_v25 = vclamps-f32 %v175_v21, 1.0 }
  0xc4   :  { %v178_v24 = vadd.f32 1.0, %v263_v22 }
  0xc5   :  { %v179_v27 = vadd.f32 1.0, %v264_v25 }
  0xc6   :  { %v180_v26 = vmul.f32 %v178_v24, %v94_v23 }
  0xc7   :  { %v181_v13 = vmul.f32 %v179_v27, %v95_v28 }
  0xc8   :  { %v183_v12 = vsel %vm182_vm9, %v180_v26, 0.0 }
  0xc9   :  { %184 = vadd.xlane.f32.xlu0 %v183_v12  ;;  %v186_v29 = vsel %vm182_vm9, %v181_v13, 0.0 }
  0xd1   :  { %187 = vadd.xlane.f32.xlu0 %v186_v29 }
 0x13c   :  { %v185_v36 = vpop.xlane.xlu0 %184 }
 0x13d   :  { %v196_v37 = vmul.f32 %v195_v35, %v185_v36 }
 0x13f   :  { %v198_v11 = vsub.f32 %v180_v26, %v196_v37 }
 0x141   :  { %v236_v39 = vmul.f32 %v275_v38, %v198_v11  ;;  %v200_v40 = vmul.f32 %v198_v11, %v198_v11 }
 0x143   :  { %v238_v41 = vsel %vm182_vm9, %v236_v39, 0.0  ;;  %v202_v42 = vsel %vm182_vm9, %v200_v40, 0.0 }
 0x144   :  { %239 = vadd.xlane.f32.xlu2 %v238_v41  ;;  %203 = vadd.xlane.f32.xlu1 %v202_v42  ;;  %v188_v43 = vpop.xlane.xlu0 %187 }
 0x145   :  { %v197_v44 = vmul.f32 %v195_v35, %v188_v43 }
 0x147   :  { %v199_v45 = vsub.f32 %v181_v13, %v197_v44 }
 0x149   :  { %v237_v46 = vmul.f32 %v275_v38, %v199_v45  ;;  %v201_v47 = vmul.f32 %v199_v45, %v199_v45 }
 0x14b   :  { %v241_v48 = vsel %vm182_vm9, %v237_v46, 0.0  ;;  %v205_v49 = vsel %vm182_vm9, %v201_v47, 0.0 }
 0x14c   :  { %242 = vadd.xlane.f32.xlu2 %v241_v48  ;;  %206 = vadd.xlane.f32.xlu1 %v205_v49 }
 0x1b7   :  { %v204_v50 = vpop.xlane.xlu1 %203  ;;  %v240_v62 = vpop.xlane.xlu2 %239 }
 0x1b8   :  { %v208_v51 = vmul.f32 %v204_v50, %v195_v35 }
 0x1ba   :  { %v210_v52 = vadd.f32 1e-12, %v208_v51 }
 0x1bc   :  { %283 = vrsqrt.f32 %v210_v52  ;;  %vm218_vm12 = vweird.f32 %v210_v52 }
 0x1bf   :  { %v207_v53 = vpop.xlane.xlu1 %206  ;;  %v243_v9 = vpop.xlane.xlu2 %242 }
 0x1c0   :  { %v209_v54 = vmul.f32 %v207_v53, %v195_v35 }
 0x1c2   :  { %v284_v55 = vpop.eup %283  ;;  %v211_v56 = vadd.f32 1e-12, %v209_v54 }
 0x1c3   :  { %v213_v57 = vmul.f32 %v284_v55, %v210_v52  ;;  %vm219_vm11 = vweird.f32 %v284_v55 }
 0x1c4   :  { %285 = vrsqrt.f32 %v211_v56  ;;  %vm220_vm13 = vmor %vm218_vm12, %vm219_vm11  ;;  %vm228_vm0 = vweird.f32 %v211_v56 }
 0x1c5   :  { %v214_v58 = vmul.f32 %v284_v55, %v213_v57 }
 0x1c7   :  { %v215_v59 = vmul.f32 0.5, %v214_v58 }
 0x1c9   :  { %v216_v60 = vsub.f32 1.5, %v215_v59 }
 0x1ca   :  { %v286_v61 = vpop.eup %285 }
 0x1cb   :  { %v217_v63 = vmul.f32 %v284_v55, %v216_v60  ;;  %v223_v0 = vmul.f32 %v286_v61, %v211_v56  ;;  %vm229_vm15 = vweird.f32 %v286_v61 }
 0x1cc   :  { %vm230_vm1 = vmor %vm228_vm0, %vm229_vm15 }
 0x1cd   :  { %v221_v2 = vsel %vm220_vm13, %v284_v55, %v217_v63  ;;  %v224_v3 = vmul.f32 %v286_v61, %v223_v0 }
 0x1ce   :  { %v244_v4 = vmul.f32 %v240_v62, %v221_v2 }
 0x1cf   :  { %v225_v5 = vmul.f32 0.5, %v224_v3 }
 0x1d0   :  { %v250_v6 = vadd.f32 %v276_v1, %v244_v4 }
 0x1d1   :  { %v226_v7 = vsub.f32 1.5, %v225_v5 }
 0x1d2   :  { %253 = vst.msk [vmem:[%s424_s5] sm:$0xff] %vm252_vm14, %v250_v6 }
 0x1d3   :  { %v227_v8 = vmul.f32 %v286_v61, %v226_v7 }
 0x1d5   :  { %v231_v14 = vsel %vm230_vm1, %v286_v61, %v227_v8 }
 0x1d6   :  { %v245_v15 = vmul.f32 %v243_v9, %v231_v14 }
 0x1d8   :  { %v251_v16 = vadd.f32 %v276_v1, %v245_v15 }
 0x1da   :  { %254 = vst.msk [vmem:[%s424_s5 + $0x8] sm:$0xff] %vm252_vm14, %v251_v16 }
 0x1db   :  { %259 = vsyncpa [#allocation4], 1 }
 0x1dc   :  { %260 = vsyncpa [#allocation6], 1 }

</bundles_post_ra>
